<compile_context>
chip_gen: v5e
topology: v5e:2x2
jax: 0.10.0
libtpu: 0.0.40
codegen_flags: <defaults>
</compile_context>

<pallas_src>
import jax
import jax.numpy as jnp
from jax import lax
from jax.experimental import pallas as pl
from jax.experimental.pallas import tpu as pltpu


def _round_up(v, m):
    return ((v + m - 1) // m) * m


def _vmem_limit_bytes():
    """Generation-aware scoped-VMEM limit (v7x: 64 MiB physical, v5e/v6e: 128 MiB)."""
    try:
        cap = int(pltpu.get_tpu_info().vmem_capacity_bytes)
    except Exception:
        cap = 64 << 20  # assume the smallest generation if the query is unavailable
    return int(min(96 << 20, max(32 << 20, (cap * 3) // 4)))


# ---------------------------------------------------------------------------
# Pass 1: per-channel sum and sum-of-squares (reduction over N and H*W).
# ---------------------------------------------------------------------------
def _make_stats_kernel(C, T, sub, hw, need_mask):
    n_sub = T // sub
    align = 128 if sub % 128 == 0 else sub

    def kernel(x_ref, sum_ref, sq_ref):
        # (1, C, sub) accumulators, resident across the HW-tile axis.
        @pl.when(pl.program_id(1) == 0)
        def _():
            sum_ref[...] = jnp.zeros_like(sum_ref)
            sq_ref[...] = jnp.zeros_like(sq_ref)

        m = pl.program_id(1)
        if need_mask:
            lane = lax.broadcasted_iota(jnp.int32, (C, sub), 1)
            base = m * T

        def body(j, carry):
            acc_s, acc_q = carry
            start = pl.multiple_of(j * sub, align)
            chunk = x_ref[0, :, pl.ds(start, sub)].astype(jnp.float32)
            if need_mask:
                col = base + start + lane
                chunk = jnp.where(col < hw, chunk, 0.0)
            return acc_s + chunk, acc_q + chunk * chunk

        init = (jnp.zeros((C, sub), jnp.float32),
                jnp.zeros((C, sub), jnp.float32))
        acc_s, acc_q = lax.fori_loop(0, n_sub, body, init)
        sum_ref[0] += acc_s
        sq_ref[0] += acc_q

    return kernel


# ---------------------------------------------------------------------------
# Pass 2: out = scale[c] * x + shift[c]  (normalize + affine, fused).
# ---------------------------------------------------------------------------
def _make_norm_kernel(C, T, sub):
    n_sub = T // sub
    align = 128 if sub % 128 == 0 else sub

    def kernel(x_ref, scale_ref, shift_ref, o_ref):
        # Hoist the lane-broadcasts out of the loop (loop-invariant vregs).
        scale = jnp.broadcast_to(scale_ref[...], (C, sub))
        shift = jnp.broadcast_to(shift_ref[...], (C, sub))

        def body(j, carry):
            start = pl.multiple_of(j * sub, align)
            x = x_ref[0, :, pl.ds(start, sub)].astype(jnp.float32)
            o_ref[0, :, pl.ds(start, sub)] = (x * scale + shift).astype(o_ref.dtype)
            return carry

        lax.fori_loop(0, n_sub, body, 0)

    return kernel


# ---------------------------------------------------------------------------
# Forward wrapper.
# ---------------------------------------------------------------------------
def variance_qbatchnorm2d(x, gamma, beta, *, eps=1e-5):
    N, C, H, W = x.shape
    assert C % 4 == 0, "channels must be a multiple of 4 (quaternion layout)"
    Cq = C // 4
    HW = H * W

    # Contiguous reshape only — no HBM copy, no padding pass.
    x3 = x.reshape(N, C, HW)
    itemsize = jnp.dtype(x.dtype).itemsize
    vmem_limit = _vmem_limit_bytes()

    # --- tiling policy ------------------------------------------------------
    # SUB: lane width processed per inner-loop step (bounds live vregs and is
    # the accumulator width).  T: lanes per grid block (big to amortize the
    # ~0.35us per-grid-step overhead; pass 2 double-buffers input + output so
    # keep 4*block within the scoped-VMEM budget; target <= 8 MiB per block).
    if HW < 128:
        SUB = HW                      # block == full dim (allowed by (8,128) rule)
        T = HW
    else:
        hw_floor = (HW // 128) * 128  # largest 128-multiple <= HW
        SUB = min(512, hw_floor)
        block_bytes = max(C * SUB * itemsize, min(8 << 20, vmem_limit // 5))
        T = max(SUB, (block_bytes // (C * itemsize)) // SUB * SUB)
        T = min(T, (hw_floor // SUB) * SUB)   # never exceed the array extent
    grid_m = pl.cdiv(HW, T)
    grid = (N, grid_m)
    need_mask = (HW % T) != 0         # only the tail tile has invalid lanes

    # ---- pass 1: per-channel statistics -------------------------------------
    stats_kernel = _make_stats_kernel(C, T, SUB, HW, need_mask)
    sums, sqs = pl.pallas_call(
        stats_kernel,
        out_shape=(jax.ShapeDtypeStruct((N, C, SUB), jnp.float32),
                   jax.ShapeDtypeStruct((N, C, SUB), jnp.float32)),
        grid=grid,
        in_specs=[pl.BlockSpec((1, C, T), lambda n, m: (n, 0, m))],
        out_specs=(pl.BlockSpec((1, C, SUB), lambda n, m: (n, 0, 0)),
                   pl.BlockSpec((1, C, SUB), lambda n, m: (n, 0, 0))),
        compiler_params=pltpu.CompilerParams(
            dimension_semantics=("parallel", "arbitrary"),
            vmem_limit_bytes=vmem_limit),
        cost_estimate=pl.CostEstimate(
            flops=3 * N * C * HW, transcendentals=0,
            bytes_accessed=N * C * HW * itemsize + 2 * N * C * SUB * 4),
    )(x3)

    # ---- glue: O(C) finalization --------------------------------------------
    count = jnp.float32(N * HW)
    ch_sum = jnp.sum(sums, axis=(0, 2))            # (C,) final lane/batch reduce
    ch_sq = jnp.sum(sqs, axis=(0, 2))              # (C,)
    mean = ch_sum / count
    # NOTE: variance via E[x^2] - mean^2 keeps the kernel at two streaming
    # passes; in f32 this cancels when |mean| >> std.
    # TODO(synk): add an optional centered (3-pass) path for that regime.
    var_ch = jnp.maximum(ch_sq / count - mean * mean, 0.0)
    var_q = var_ch.reshape(4, Cq).sum(axis=0)      # per-quaternion variance
    inv_full = jnp.tile(lax.rsqrt(var_q + jnp.float32(eps)), 4)   # (C,)
    if gamma is not None:
        scale = jnp.tile(gamma.reshape(Cq).astype(jnp.float32), 4) * inv_full
        shift = beta.reshape(C).astype(jnp.float32) - scale * mean
    else:
        scale = inv_full
        shift = -scale * mean
    scale2 = scale.reshape(C, 1)
    shift2 = shift.reshape(C, 1)

    # ---- pass 2: normalize + affine (writes the unpadded output directly) ----
    norm_kernel = _make_norm_kernel(C, T, SUB)
    y = pl.pallas_call(
        norm_kernel,
        out_shape=jax.ShapeDtypeStruct((N, C, HW), x.dtype),
        grid=grid,
        in_specs=[pl.BlockSpec((1, C, T), lambda n, m: (n, 0, m)),
                  pl.BlockSpec((C, 1), lambda n, m: (0, 0)),
                  pl.BlockSpec((C, 1), lambda n, m: (0, 0))],
        out_specs=pl.BlockSpec((1, C, T), lambda n, m: (n, 0, m)),
        compiler_params=pltpu.CompilerParams(
            dimension_semantics=("parallel", "parallel"),
            vmem_limit_bytes=vmem_limit),
        cost_estimate=pl.CostEstimate(
            flops=2 * N * C * HW, transcendentals=0,
            bytes_accessed=2 * N * C * HW * itemsize),
    )(x3, scale2, shift2)

    return y.reshape(N, C, H, W)


# ---------------------------------------------------------------------------
# Module equivalent of _VarianceQBatchNorm2d.
# ---------------------------------------------------------------------------
class VarianceQBatchNorm2d:
    """JAX/Pallas port of the torch _VarianceQBatchNorm2d forward pass.

    The reference module keeps no running statistics — it always normalizes
    with batch statistics — so `momentum` is stored but unused, matching it.
    """

    def __init__(self, num_features, eps=1e-5, momentum=0.1, affine=True,
                 gamma_init=1.0):
        self.num_features = num_features // 4
        self.eps = eps
        self.momentum = momentum  # unused in the reference forward
        self.gamma_init = gamma_init
        self.affine = affine
        if affine:
            self.gamma = jnp.full((1, self.num_features, 1, 1), gamma_init,
                                  jnp.float32)
            self.beta = jnp.zeros((1, self.num_features * 4, 1, 1), jnp.float32)
        else:
            self.gamma = None
            self.beta = None

    def __call__(self, x):
        assert x.ndim == 4  # (N, C, H, W)
        return variance_qbatchnorm2d(x, self.gamma, self.beta, eps=self.eps)


# ---------------------------------------------------------------------------
# Pure-JAX reference (mirrors the torch forward) for the correctness check.
# ---------------------------------------------------------------------------
def _reference(x, gamma, beta, eps):
    comps = jnp.split(x, 4, axis=1)
    dims = (0, 2, 3)
    deltas = [c - jnp.mean(c, axis=dims, keepdims=True) for c in comps]
    quat_var = jnp.mean(sum(d * d for d in deltas), axis=dims, keepdims=True)
    denom = jnp.sqrt(quat_var + eps)
    normed = [d / denom for d in deltas]
    if gamma is not None:
        betas = jnp.split(beta, 4, axis=1)
        normed = [gamma * n + b for n, b in zip(normed, betas)]
    return jnp.concatenate(normed, axis=1)


if __name__ == "__main__":
    key = jax.random.PRNGKey(0)
    kx, kg, kb, kx2 = jax.random.split(key, 4)

    # Test 1: 128-aligned spatial size (batch=2, channels=8 -> 2 quaternions).
    x = jax.random.normal(kx, (2, 8, 16, 16), jnp.float32)
    layer = VarianceQBatchNorm2d(num_features=8, eps=1e-5)
    # Non-trivial deterministic affine params so the affine path is exercised.
    layer.gamma = 1.0 + 0.5 * jax.random.normal(kg, (1, 2, 1, 1), jnp.float32)
    layer.beta = 0.1 * jax.random.normal(kb, (1, 8, 1, 1), jnp.float32)

    out = jax.block_until_ready(layer(x))
    assert out.shape == x.shape, out.shape
    ref = _reference(x, layer.gamma, layer.beta, layer.eps)
    err = float(jnp.max(jnp.abs(out - ref)))
    assert jnp.allclose(out, ref, atol=1e-4, rtol=1e-4), err

    # Test 2: ragged spatial size (H*W = 150, not a multiple of 128) exercises
    # the in-kernel tail mask and the dropped-on-write tail block.
    x2 = 0.5 + jax.random.normal(kx2, (2, 8, 10, 15), jnp.float32)
    out2 = jax.block_until_ready(layer(x2))
    assert out2.shape == x2.shape, out2.shape
    ref2 = _reference(x2, layer.gamma, layer.beta, layer.eps)
    err2 = float(jnp.max(jnp.abs(out2 - ref2)))
    assert jnp.allclose(out2, ref2, atol=1e-4, rtol=1e-4), err2

    print("KERNEL_OK")
</pallas_src>

<mosaic_0001>
module attributes {stable_mosaic.version = 11 : i64} {
  func.func @kernel(%arg0: i32, %arg1: i32, %arg2: memref<1x8x256xf32, #tpu.memory_space<vmem>>, %arg3: memref<1x8x256xf32, #tpu.memory_space<vmem>>, %arg4: memref<1x8x256xf32, #tpu.memory_space<vmem>>) attributes {dimension_semantics = [#tpu.dimension_semantics<parallel>, #tpu.dimension_semantics<arbitrary>], iteration_bounds = array<i64: 2, 1>, scalar_prefetch = 0 : i64, scratch_operands = 0 : i64, tpu.core_type = #tpu.core_type<tc>, window_params = [{transform_indices = @transform_0, window_bounds = array<i64: 1, 8, 256>}, {transform_indices = @transform_1, window_bounds = array<i64: 1, 8, 256>}, {transform_indices = @transform_2, window_bounds = array<i64: 1, 8, 256>}]} {
    %c0_i32 = arith.constant 0 : i32
    %0 = arith.cmpi eq, %arg1, %c0_i32 : i32
    %1 = arith.extui %0 : i1 to i32
    %c0_i32_0 = arith.constant 0 : i32
    %2 = arith.cmpi ne, %1, %c0_i32_0 : i32
    scf.if %2 {
      %cst_16 = arith.constant 0.000000e+00 : f32
      %25 = vector.broadcast %cst_16 : f32 to vector<1x8x256xf32>
      %c0_17 = arith.constant 0 : index
      %c0_18 = arith.constant 0 : index
      %c0_19 = arith.constant 0 : index
      %26 = vector.load %arg3[%c0_17, %c0_18, %c0_19] : memref<1x8x256xf32, #tpu.memory_space<vmem>>, vector<1x8x256xf32>
      tpu.vector_store %arg3[%c0_17, %c0_18, %c0_19], %25 {strides = array<i32>} : memref<1x8x256xf32, #tpu.memory_space<vmem>>, vector<1x8x256xf32>,
      %cst_20 = arith.constant 0.000000e+00 : f32
      %27 = vector.broadcast %cst_20 : f32 to vector<1x8x256xf32>
      %c0_21 = arith.constant 0 : index
      %c0_22 = arith.constant 0 : index
      %c0_23 = arith.constant 0 : index
      %28 = vector.load %arg4[%c0_21, %c0_22, %c0_23] : memref<1x8x256xf32, #tpu.memory_space<vmem>>, vector<1x8x256xf32>
      tpu.vector_store %arg4[%c0_21, %c0_22, %c0_23], %27 {strides = array<i32>} : memref<1x8x256xf32, #tpu.memory_space<vmem>>, vector<1x8x256xf32>,
    } else {
    }
    %cst = arith.constant 0.000000e+00 : f32
    %3 = vector.broadcast %cst : f32 to vector<8x256xf32>
    %cst_1 = arith.constant 0.000000e+00 : f32
    %4 = vector.broadcast %cst_1 : f32 to vector<8x256xf32>
    %c0_i32_2 = arith.constant 0 : i32
    %c256_i32 = arith.constant 256 : i32
    %5 = arith.muli %c0_i32_2, %c256_i32 : i32
    %6 = tpu.assume_multiple %5, 128 : i32
    %c0 = arith.constant 0 : index
    %c0_3 = arith.constant 0 : index
    %7 = arith.index_cast %6 : i32 to index
    %8 = vector.load %arg2[%c0, %c0_3, %7] : memref<1x8x256xf32, #tpu.memory_space<vmem>>, vector<1x8x256xf32>
    %9 = vector.shape_cast %8 : vector<1x8x256xf32> to vector<8x256xf32>
    %10 = arith.addf %3, %9 : vector<8x256xf32>
    %11 = arith.mulf %9, %9 : vector<8x256xf32>
    %12 = arith.addf %4, %11 : vector<8x256xf32>
    %c1_i32 = arith.constant 1 : i32
    %c0_4 = arith.constant 0 : index
    %c0_5 = arith.constant 0 : index
    %c0_6 = arith.constant 0 : index
    %13 = vector.load %arg3[%c0_4, %c0_5, %c0_6] : memref<1x8x256xf32, #tpu.memory_space<vmem>>, vector<1x8x256xf32>
    %14 = vector.shape_cast %13 : vector<1x8x256xf32> to vector<8x256xf32>
    %15 = arith.addf %14, %10 : vector<8x256xf32>
    %c0_7 = arith.constant 0 : index
    %c0_8 = arith.constant 0 : index
    %c0_9 = arith.constant 0 : index
    %16 = vector.load %arg3[%c0_7, %c0_8, %c0_9] : memref<1x8x256xf32, #tpu.memory_space<vmem>>, vector<1x8x256xf32>
    %17 = vector.shape_cast %16 : vector<1x8x256xf32> to vector<8x256xf32>
    %18 = vector.shape_cast %15 : vector<8x256xf32> to vector<1x8x256xf32>
    tpu.vector_store %arg3[%c0_7, %c0_8, %c0_9], %18 {strides = array<i32>} : memref<1x8x256xf32, #tpu.memory_space<vmem>>, vector<1x8x256xf32>,
    %c0_10 = arith.constant 0 : index
    %c0_11 = arith.constant 0 : index
    %c0_12 = arith.constant 0 : index
    %19 = vector.load %arg4[%c0_10, %c0_11, %c0_12] : memref<1x8x256xf32, #tpu.memory_space<vmem>>, vector<1x8x256xf32>
    %20 = vector.shape_cast %19 : vector<1x8x256xf32> to vector<8x256xf32>
    %21 = arith.addf %20, %12 : vector<8x256xf32>
    %c0_13 = arith.constant 0 : index
    %c0_14 = arith.constant 0 : index
    %c0_15 = arith.constant 0 : index
    %22 = vector.load %arg4[%c0_13, %c0_14, %c0_15] : memref<1x8x256xf32, #tpu.memory_space<vmem>>, vector<1x8x256xf32>
    %23 = vector.shape_cast %22 : vector<1x8x256xf32> to vector<8x256xf32>
    %24 = vector.shape_cast %21 : vector<8x256xf32> to vector<1x8x256xf32>
    tpu.vector_store %arg4[%c0_13, %c0_14, %c0_15], %24 {strides = array<i32>} : memref<1x8x256xf32, #tpu.memory_space<vmem>>, vector<1x8x256xf32>,
    return
  }
  func.func @transform_0(%arg0: i32, %arg1: i32) -> (i32, i32, i32) {
    %c0_i32 = arith.constant 0 : i32
    %c0_i32_0 = arith.constant 0 : i32
    return %arg0, %c0_i32, %arg1 : i32, i32, i32
  }
  func.func @transform_1(%arg0: i32, %arg1: i32) -> (i32, i32, i32) {
    %c0_i32 = arith.constant 0 : i32
    %c0_i32_0 = arith.constant 0 : i32
    %c0_i32_1 = arith.constant 0 : i32
    return %arg0, %c0_i32, %c0_i32_0 : i32, i32, i32
  }
  func.func @transform_2(%arg0: i32, %arg1: i32) -> (i32, i32, i32) {
    %c0_i32 = arith.constant 0 : i32
    %c0_i32_0 = arith.constant 0 : i32
    %c0_i32_1 = arith.constant 0 : i32
    return %arg0, %c0_i32, %c0_i32_0 : i32, i32, i32
  }
}

</mosaic_0001>

<bundles_post_ra>
// kernel: tpu_custom_call.1
= control target key start
LH: loop header
LB: loop body
LE: loop exit
PB: predicated region body
PF: predicated region fallthrough
CT: control target
= control target key end

     0   :  { %8 = vsyncpa [#allocation3], 0  ;;  %s761_s0 = inlined_call_operand.hbm [shape: f32[2,8,256], index: 0, kind: input, shape index: {}]   ;;  %s762_s1 = inlined_call_operand.hbm [shape: f32[2,8,256], index: 1, kind: output, shape index: {0}]   ;;  %s763_s2 = inlined_call_operand.hbm [shape: f32[2,8,256], index: 2, kind: output, shape index: {1}]  }
   0x1   :  { %10 = vsyncpa [#allocation3 + $0x1], 0 }
   0x2   :  { %11 = vsyncpa [#allocation4], 0 }
   0x3   :  { %13 = vsyncpa [#allocation4 + $0x1], 0 }
   0x4   :  { %14 = vsyncpa [#allocation7], 0 }
   0x5   :  { %16 = vsyncpa [#allocation7 + $0x1], 0  ;;  %s620_s9 = smov 0   ;;  %s622_s10 = smov 0  }
   0x6   :  { %s624_s11 = smov 0   ;;  %s626_s12 = smov 0  }
   0x7   :  { %s628_s13 = smov 0   ;;  %s630_s14 = smov 0  }
   0x8 LB: > { %s369_s15 = sadd.s32 4294967295, %s603_s14   ;;  %s370_s16 = sadd.s32 4294967294, %s603_s14   ;;  %s603_s14 = sphi %s630_s14, %s22_s14   ;;  %s599_s13 = sphi %s628_s13, %s772_s13   ;;  %s595_s12 = sphi %s626_s12, %s771_s12   ;;  %s591_s11 = sphi %s624_s11, %s770_s11   ;;  %s587_s10 = sphi %s622_s10, %s769_s10   ;;  %s583_s9 = sphi %s620_s9, %s768_s9  }
   0x9   : > { %s34_s17 = sadd.s32 1, %s599_s13  ;;  %s43_s18 = sadd.s32 1, %s591_s11 }
   0xa   : > { %p36_p0 = scmp.ge.s32.totalorder %s34_s17, 2  ;;  %p50_p1 = scmp.ne.s32.totalorder %s591_s11, %s587_s10 }
   0xb   : > { %p51_p2 = scmp.eq.s32.totalorder %s603_s14, 0  ;;  %p56_p3 = scmp.ne.s32.totalorder %s587_s10, %s583_s9 }
   0xc   : > { %s774_s17 = smov (%p36_p0, %s34_s17), 0  ;;  %p57_p5 = scmp.eq.s32.totalorder %s369_s15, 0 }
   0xd   : > { %p661_p4 = por %p51_p2, %p50_p1  ;;  %s38_s20 = ssub.s32 %s599_s13, %s774_s17 }
   0xe   : > { %p80_p6 = scmp.eq.s32.totalorder %s369_s15, 1  ;;  %p41_p7 = scmp.eq.s32.totalorder %s38_s20, 0 }
   0xf   : > { %p667_p8 = por %p57_p5, %p56_p3  ;;  %p86_p10 = scmp.eq.s32.totalorder %s370_s16, 1 }
  0x10   : > { %p671_p9 = por %p80_p6, %p50_p1  ;;  %p372_p12 = scmp.ge.s32.totalorder %s603_s14, 2 }
  0x11   : > { %s676_s23 = scalar_select %p41_p7, %s591_s11, %s43_s18  }
  0x12   : > { %p678_p11 = por %p86_p10, %p56_p3  ;;  %p408_p13 = scmp.lt.s32.totalorder %s603_s14, 2 }
  0x13   : > { %s132_s25 = sand.u32 1, %s591_s11   ;;  %s388_s27 = sshll.u32 %s599_s13, 4 }
  0x14   : > { %s373_s26 = sshll.u32 %s132_s25, 4  ;;  %s143_s30 = scalar_lea.hbm %s761_s0, %s388_s27 }
  0x15   : > { %s136_s3 = scalar_lea.vmem [#allocation2], %s373_s26  ;;  %s145_s5 = sshll.u32 %s143_s30, 4  ;;  %s146_s5 = int_to_ptr.hbm [resolvable:$true] %s145_s5 }
  0x16   : > { %s147_s4 = sshll.u32 %s136_s3, 4  ;;  %p398_p0 = pnand %p408_p13, %p661_p4  ;;  %s148_s4 = int_to_ptr.vmem [resolvable:$true] %s147_s4 }
  0x17   : > { %p376_p1 = scmp.ge.s32.totalorder %s603_s14, 1  ;;  %p152_p2 = scmp.lt.s32.totalorder %s603_s14, 3 }
  0x18   : > { %s133_s6 = scalar_lea.sflag [#allocation3], %s132_s25 }
  0x19   : > { %400 = dma.hbm_to_vmem [thread:$0]  (!%p398_p0), %s146_s5, 256, %s148_s4, %s133_s6  }
  0x1a   : > { %p153_p3 = pnand %p376_p1, %p152_p2 }
  0x1b   : > { %s694_s7 = sand.u32 (!%p153_p3), 1, %s587_s10  }
  0x1c   : > { %156 = sbr.rel (%p153_p3) target bundleno = 63 (0x3f), region = 24  ;;  %s377_s8 = sshll.u32 (!%p153_p3), %s694_s7, 4 }
  0x1d   : > { %s159_s15 = scalar_lea.sflag (!%p153_p3), [#allocation3], %s694_s7  ;;  %s162_s16 = scalar_lea.vmem (!%p153_p3), [#allocation2], %s377_s8 }
  0x21   : > { %570 = dma.done.wait (%p667_p8), %s159_s15, 256  }
  0x22   : > { %572 = vsyncadd (%p667_p8), %s159_s15, 4294967040  ;;  %s389_s18 = sshll.u32 %s595_s12, 4  ;;  %s181_s29 = scalar_lea.vmem [#allocation5], %s377_s8  ;;  %v198_v0 = vld [vmem:[%s162_s16] sm:$0xff]  ;;  %v199_v1 = vld [vmem:[%s162_s16 + $0x8] sm:$0xff] }
  0x23   : > { %s235_s25 = scalar_lea.hbm %s762_s1, %s389_s18  ;;  %s250_s28 = scalar_lea.hbm %s763_s2, %s389_s18  ;;  %v202_v2 = vmul.f32 %v198_v0, %v198_v0  ;;  %v203_v3 = vmul.f32 %v199_v1, %v199_v1  ;;  %210 = vst [vmem:[%s181_s29] sm:$0xff] %v198_v0 }
  0x24   : > { %s237_s30 = sshll.u32 %s181_s29, 4  ;;  %s239_s3 = sshll.u32 %s235_s25, 4  ;;  %211 = vst [vmem:[%s181_s29 + $0x8] sm:$0xff] %v199_v1  ;;  %s238_s30 = int_to_ptr.vmem [resolvable:$true] %s237_s30  ;;  %s240_s3 = int_to_ptr.hbm [resolvable:$true] %s239_s3 }
  0x25   : > { %s188_s21 = scalar_lea.vmem [#allocation6], %s377_s8  ;;  %s254_s12 = sshll.u32 %s250_s28, 4  ;;  %s711_s12 = int_to_ptr.hbm [resolvable:$true] %s254_s12 }
  0x26   : > { %s252_s4 = sshll.u32 %s188_s21, 4  ;;  %216 = vst [vmem:[%s188_s21] sm:$0xff] %v202_v2  ;;  %s219_s5 = scalar_lea.sflag [#allocation4], %s694_s7  ;;  %s709_s4 = int_to_ptr.vmem [resolvable:$true] %s252_s4 }
  0x27   : > { %s503_s6 = sshra.s32 %s240_s3, 4  ;;  %s509_s18 = scalar_lea.hbm %s762_s1, 32  ;;  %s504_s6 = int_to_ptr.hbm [resolvable:$true] %s503_s6 }
  0x28   : > { %s505_s15 = scalar_lea.hbm %s504_s6, 16  ;;  %p510_p7 = scmp.lt.s32.totalorder %s504_s6, %s762_s1 }
  0x29   : > { %p506_p4 = scmp.ne.s32.totalorder %s504_s6, %s505_s15  ;;  %p511_p8 = scmp.lt.s32.totalorder %s509_s18, %s505_s15 }
  0x2b   : > { %p507_p5 = pnand %p506_p4, %p671_p9  ;;  %p512_p10 = por %p511_p8, %p510_p7 }
  0x2d   : > { %p508_p6 = pneg %p507_p5 }
  0x2f   : > { %p513_p13 = pnand %p512_p10, %p508_p6 }
  0x31   : > { %516 = shalt.err (!%p513_p13)
}
  0x32   : > { %393 = dma.vmem_to_hbm [thread:$0]  (%p671_p9), %s238_s30, 256, %s240_s3, %s219_s5   ;;  %217 = vst [vmem:[%s188_s21 + $0x8] sm:$0xff] %v203_v3 }
  0x33   : > { %s224_s25 = scalar_lea.sflag [#allocation7], %s694_s7  ;;  %s531_s26 = sshra.s32 %s711_s12, 4  ;;  %s532_s26 = int_to_ptr.hbm [resolvable:$true] %s531_s26 }
  0x34   : > { %s533_s27 = scalar_lea.hbm %s532_s26, 16  ;;  %s537_s6 = scalar_lea.hbm %s763_s2, 32 }
  0x35   : > { %p534_p0 = scmp.ne.s32.totalorder %s532_s26, %s533_s27  ;;  %p538_p3 = scmp.lt.s32.totalorder %s532_s26, %s763_s2 }
  0x36   : > { %p539_p4 = scmp.lt.s32.totalorder %s537_s6, %s533_s27 }
  0x37   : > { %p535_p1 = pnand %p534_p0, %p671_p9 }
  0x38   : > { %p540_p5 = por %p539_p4, %p538_p3 }
  0x39   : > { %p536_p2 = pneg %p535_p1 }
  0x3b   : > { %p541_p6 = pnand %p540_p5, %p536_p2 }
  0x3d   : > { %544 = shalt.err (!%p541_p6)
}
  0x3e   : > { %394 = dma.vmem_to_hbm [thread:$0]  (%p671_p9), %s709_s4, 256, %s711_s12, %s224_s25  }
  0x3f PF: > { %s266_s7 = sand.u32 1, %s583_s9   ;;  %p402_p7 = pnand %p372_p12, %p678_p11 }
  0x40   : > { %s267_s30 = scalar_lea.sflag [#allocation4], %s266_s7 }
  0x41   : > { %p403_p8 = pneg %p402_p7 }
  0x43   : > { %574 = dma.done.wait (%p403_p8), %s267_s30, 256  }
  0x44   : > { %576 = vsyncadd (%p403_p8), %s267_s30, 4294967040  ;;  %s277_s3 = scalar_lea.sflag [#allocation7], %s266_s7 }
  0x45   : > { %578 = dma.done.wait (%p403_p8), %s277_s3, 256  }
  0x46   : > { %580 = vsyncadd (%p403_p8), %s277_s3, 4294967040  ;;  %s22_s14 = sadd.s32 1, %s603_s14   ;;  %s768_s9 = smov %s587_s10 }
  0x47   : > { %p19_p10 = scmp.ge.s32.totalorder %s22_s14, 4   ;;  %s769_s10 = smov %s591_s11 }
  0x48   : > { %s770_s11 = smov %s676_s23  ;;  %s771_s12 = smov %s599_s13 }
  0x49   : > { %s772_s13 = smov %s774_s17  ;;  %21 = sbr.rel (!%p19_p10) target bundleno = 8 (0x8), region = 90 }
  0x4e   :  { %283 = vsyncpa [#allocation3], 1 }
  0x4f   :  { %285 = vsyncpa [#allocation3 + $0x1], 1 }
  0x50   :  { %286 = vsyncpa [#allocation4], 1 }
  0x51   :  { %288 = vsyncpa [#allocation4 + $0x1], 1 }
  0x52   :  { %289 = vsyncpa [#allocation7], 1 }
  0x53   :  { %291 = vsyncpa [#allocation7 + $0x1], 1 }

</bundles_post_ra>
